<compile_context>
chip_gen: v6e
topology: v6e:2x2x1
jax: 0.10.0
libtpu: 0.0.40
codegen_flags: <defaults>
</compile_context>

<pallas_src>
import functools

import numpy as np
import jax
import jax.numpy as jnp
from jax.experimental import pallas as pl
from jax.experimental.pallas import tpu as pltpu


def _floordiv_small(x, d):
    """Exact floor(x / d) for small non-negative int32 vectors.

    Implemented as f32 (x + 0.5) * (1/d) + floor: (x + 0.5)/d is at least
    0.5/d away from any integer, far above f32 rounding error for the ranges
    used here, and vector integer division is avoided (not reliably lowered
    on the TPU VPU).
    """
    return jnp.floor((x.astype(jnp.float32) + 0.5) * (1.0 / float(d))).astype(jnp.int32)


def _head_kernel(patches_ref, w1p_ref, out_ref, *, k, r, r2,
                 hh1, ww1, hh2, ww2, eps):
    r_pad = patches_ref.shape[1]
    r2_pad = out_ref.shape[1]

    # Packed parameter tile: conv1 weights + [gamma, beta, w2] tail columns.
    w1m = w1p_ref[:, :k]                                    # (c1, K)
    params = w1p_ref[:, k:k + 3]                            # (c1, 3)
    gamma = params[:, 0:1]
    beta = params[:, 1:2]
    w2v = params[:, 2:3]

    # conv1 as one GEMM: channels on sublanes, positions (lane-dense, padded
    # to a 128 multiple) on lanes.
    y = jnp.dot(w1m, patches_ref[...], preferred_element_type=jnp.float32)  # (c1, r_pad)

    # BatchNorm2d, training mode (module default): batch stats over (N, H, W)
    # == the first `r` lanes.  Padded lanes of y are exactly zero (zero patch
    # columns), so sums over the full lane extent scaled by 1/r are exact.
    inv_r = 1.0 / r
    lane = jax.lax.broadcasted_iota(jnp.int32, (1, r_pad), 1)
    lane_ok = (lane < r).astype(jnp.float32)                # (1, r_pad)
    mean = jnp.sum(y, axis=1, keepdims=True) * inv_r        # (c1, 1)
    diff = (y - mean) * lane_ok                             # shifted two-pass variance
    var = jnp.sum(diff * diff, axis=1, keepdims=True) * inv_r
    scale = gamma * jax.lax.rsqrt(var + eps)                # BN affine folded to FMA
    shift = beta - mean * scale
    y_act = jnp.maximum(y * scale + shift, 0.0)             # + ReLU        (c1, r_pad)

    # conv2 (1x1, no bias) channel reduction on the VPU (keeps MXU free).
    z = jnp.sum(y_act * w2v, axis=0, keepdims=True)         # (1, r_pad)

    # conv2 stride-2 / pad-2 spatial sampling: build the 0/1 selection from
    # iotas entirely in-register (no HBM selection matrix, no O(N^2) DMA),
    # then one small matvec.  All-zero columns reproduce the zero padding
    # exactly because conv2 has no bias.  Padded z lanes (>= r) are never
    # selected since every valid target index is < r.
    col = jax.lax.broadcasted_iota(jnp.int32, (1, r2_pad), 1)
    n_c = _floordiv_small(col, hh2 * ww2)                   # batch index of output col
    rem = col - n_c * (hh2 * ww2)
    jo = _floordiv_small(rem, ww2)                          # output row
    io = rem - jo * ww2                                     # output col
    src_h = 2 * jo - 2                                      # conv2 source position
    src_w = 2 * io - 2
    tgt = n_c * (hh1 * ww1) + src_h * ww1 + src_w           # flat source lane, (1, r2_pad)
    ok = ((col < r2) & (src_h >= 0) & (src_h < hh1)
          & (src_w >= 0) & (src_w < ww1))                   # (1, r2_pad)
    row = jax.lax.broadcasted_iota(jnp.int32, (r_pad, r2_pad), 0)
    sel = jnp.where((row == tgt) & ok, 1.0, 0.0)            # (r_pad, r2_pad)
    out_ref[...] = jnp.dot(z, sel, preferred_element_type=jnp.float32)


def _round_up(v, m):
    return ((v + m - 1) // m) * m


def _full_spec(shape):
    zeros = (0,) * len(shape)
    return pl.BlockSpec(shape, lambda i: zeros)


@functools.partial(jax.jit, static_argnames=("eps",))
def classifier_head_forward(x, w1, gamma, beta, w2, eps=1e-5):
    """x: (N, Cin, H, W) f32 NCHW.  w1: (C1, Cin, 3, 3).  w2: (1, C1, 1, 1)."""
    n, cin, h, w = x.shape
    c1 = w1.shape[0]
    h1 = (h + 4 - 3) // 2 + 1            # conv1 out height (k=3, s=2, p=2)
    w1s = (w + 4 - 3) // 2 + 1           # conv1 out width
    h2 = (h1 + 4 - 1) // 2 + 1           # conv2 out height (k=1, s=2, p=2)
    w2s = (w1s + 4 - 1) // 2 + 1         # conv2 out width
    k = cin * 9
    r = n * h1 * w1s
    r2 = n * h2 * w2s
    r_pad = _round_up(r, 128)            # lane-dense, full-lane vregs in-kernel
    r2_pad = _round_up(r2, 128)          # lane-dense unmasked output stores

    # ---- glue: im2col for conv1 (3x3, stride 2, pad 2), K-major layout; fused
    # by XLA under jit.
    # TODO(synk): at much larger shapes, replace this HBM patches matrix with an
    # in-kernel tap extraction (manual DMA of the padded input) and a row-tiled
    # "parallel" grid with sum/sum-sq BN accumulators so both v7x TensorCores
    # are used; unnecessary at these sizes (kernel is DMA/overhead bound).
    xp = jnp.pad(x, ((0, 0), (0, 0), (2, 2), (2, 2)))
    taps = [xp[:, :, ky:ky + 2 * h1:2, kx:kx + 2 * w1s:2]   # each (N, Cin, H1, W1)
            for ky in range(3) for kx in range(3)]
    pat = jnp.stack(taps, axis=0)                            # (9, N, Cin, H1, W1)
    patches = pat.transpose(2, 0, 1, 3, 4).reshape(k, r).astype(jnp.float32)
    patches = jnp.pad(patches, ((0, 0), (0, r_pad - r)))     # (K, R_pad), zero pad lanes

    # conv1 weights with gamma / beta / w2 folded into 3 tail columns -> one DMA.
    w1p = jnp.concatenate(
        [w1.reshape(c1, k).astype(jnp.float32),
         gamma.reshape(c1, 1).astype(jnp.float32),
         beta.reshape(c1, 1).astype(jnp.float32),
         w2.reshape(c1, 1).astype(jnp.float32)], axis=1)     # (c1, K+3)

    kernel = functools.partial(_head_kernel, k=k, r=r, r2=r2,
                               hh1=h1, ww1=w1s, hh2=h2, ww2=w2s, eps=eps)
    out = pl.pallas_call(
        kernel,
        out_shape=jax.ShapeDtypeStruct((1, r2_pad), jnp.float32),
        grid=(1,),
        in_specs=[_full_spec((k, r_pad)), _full_spec((c1, k + 3))],
        out_specs=_full_spec((1, r2_pad)),
        compiler_params=pltpu.CompilerParams(dimension_semantics=("arbitrary",)),
    )(patches, w1p)

    return out[0, :r2].reshape(n, 1, h2, w2s)                # NCHW, like PyTorch


def reference_forward(x, w1, gamma, beta, w2, eps=1e-5):
    """Pure-JAX reference of ClassifierHead.forward (training-mode BN)."""
    dn = ('NCHW', 'OIHW', 'NCHW')
    y = jax.lax.conv_general_dilated(x, w1, (2, 2), ((2, 2), (2, 2)),
                                     dimension_numbers=dn,
                                     precision=jax.lax.Precision.HIGHEST)
    mean = y.mean(axis=(0, 2, 3), keepdims=True)
    var = ((y - mean) ** 2).mean(axis=(0, 2, 3), keepdims=True)
    y = (y - mean) * jax.lax.rsqrt(var + eps)
    y = y * gamma.reshape(1, -1, 1, 1) + beta.reshape(1, -1, 1, 1)
    y = jnp.maximum(y, 0.0)
    return jax.lax.conv_general_dilated(y, w2, (2, 2), ((2, 2), (2, 2)),
                                        dimension_numbers=dn,
                                        precision=jax.lax.Precision.HIGHEST)


if __name__ == "__main__":
    num_channels = 8
    n, h, w = 2, 16, 16
    c1 = num_channels // 4

    key = jax.random.PRNGKey(0)
    kx, k1, k2 = jax.random.split(key, 3)
    x = jax.random.normal(kx, (n, num_channels, h, w), jnp.float32)
    # deterministic synthetic parameters (shapes per module __init__)
    w1 = 0.1 * jax.random.normal(k1, (c1, num_channels, 3, 3), jnp.float32)
    w2 = 0.1 * jax.random.normal(k2, (1, c1, 1, 1), jnp.float32)
    gamma = 1.0 + 0.1 * jnp.arange(c1, dtype=jnp.float32)   # BN weight
    beta = 0.05 * jnp.arange(c1, dtype=jnp.float32)         # BN bias

    out = classifier_head_forward(x, w1, gamma, beta, w2)
    out = jax.block_until_ready(out)

    ref = reference_forward(x, w1, gamma, beta, w2)
    assert out.shape == (n, 1, 7, 7), out.shape
    assert np.allclose(np.asarray(out), np.asarray(ref), atol=1e-3, rtol=1e-3), \
        float(np.max(np.abs(np.asarray(out) - np.asarray(ref))))
    print("KERNEL_OK")
</pallas_src>

<mosaic_0001>
module attributes {stable_mosaic.version = 11 : i64} {
  func.func @_head_kernel(%arg0: i32, %arg1: memref<72x256xf32, #tpu.memory_space<vmem>>, %arg2: memref<2x75xf32, #tpu.memory_space<vmem>>, %arg3: memref<1x128xf32, #tpu.memory_space<vmem>>) attributes {dimension_semantics = [#tpu.dimension_semantics<arbitrary>], iteration_bounds = array<i64: 1>, scalar_prefetch = 0 : i64, scratch_operands = 0 : i64, tpu.core_type = #tpu.core_type<tc>, window_params = [{pipeline_mode = #tpu.pipeline_mode<synchronous>, transform_indices = @transform_0, window_bounds = array<i64: 72, 256>}, {pipeline_mode = #tpu.pipeline_mode<synchronous>, transform_indices = @transform_1, window_bounds = array<i64: 2, 75>}, {pipeline_mode = #tpu.pipeline_mode<synchronous>, transform_indices = @transform_2, window_bounds = array<i64: 1, 128>}]} {
    %c0 = arith.constant 0 : index
    %c0_0 = arith.constant 0 : index
    %0 = vector.load %arg2[%c0, %c0_0] : memref<2x75xf32, #tpu.memory_space<vmem>>, vector<2x72xf32>
    %c0_1 = arith.constant 0 : index
    %c72 = arith.constant 72 : index
    %1 = vector.load %arg2[%c0_1, %c72] : memref<2x75xf32, #tpu.memory_space<vmem>>, vector<2x3xf32>
    %2 = vector.extract_strided_slice %1 {offsets = [0, 0], sizes = [2, 1], strides = [1, 1]} : vector<2x3xf32> to vector<2x1xf32>
    %3 = vector.extract_strided_slice %1 {offsets = [0, 1], sizes = [2, 1], strides = [1, 1]} : vector<2x3xf32> to vector<2x1xf32>
    %4 = vector.extract_strided_slice %1 {offsets = [0, 2], sizes = [2, 1], strides = [1, 1]} : vector<2x3xf32> to vector<2x1xf32>
    %c0_2 = arith.constant 0 : index
    %c0_3 = arith.constant 0 : index
    %5 = vector.load %arg1[%c0_2, %c0_3] : memref<72x256xf32, #tpu.memory_space<vmem>>, vector<72x256xf32>
    %cst = arith.constant dense<0.000000e+00> : vector<2x256xf32>
    %6 = tpu.matmul %0, %5, %cst {dimension_numbers = #tpu.dot_dimension_numbers<[1], [0], [0], [1], [0, 0, 1, 1], [], []>} : vector<2x72xf32>, vector<72x256xf32>, vector<2x256xf32> -> vector<2x256xf32>
    %7 = tpu.iota {dimensions = array<i32: 1>} : vector<1x256xi32>
    %c162_i32 = arith.constant 162 : i32
    %8 = vector.broadcast %c162_i32 : i32 to vector<1x256xi32>
    %9 = arith.cmpi slt, %7, %8 : vector<1x256xi32>
    %10 = arith.extui %9 : vector<1x256xi1> to vector<1x256xi32>
    %11 = arith.sitofp %10 : vector<1x256xi32> to vector<1x256xf32>
    %cst_4 = arith.constant dense<0.000000e+00> : vector<2xf32>
    %12 = vector.multi_reduction <add>, %6, %cst_4 [1] : vector<2x256xf32> to vector<2xf32>
    %13 = vector.shape_cast %12 : vector<2xf32> to vector<2x1xf32>
    %cst_5 = arith.constant 0.00617283955 : f32
    %14 = vector.broadcast %cst_5 : f32 to vector<2x1xf32>
    %15 = arith.mulf %13, %14 : vector<2x1xf32>
    %16 = vector.broadcast %15 : vector<2x1xf32> to vector<2x256xf32>
    %17 = arith.subf %6, %16 : vector<2x256xf32>
    %18 = vector.broadcast %11 : vector<1x256xf32> to vector<2x256xf32>
    %19 = arith.mulf %17, %18 : vector<2x256xf32>
    %20 = arith.mulf %19, %19 : vector<2x256xf32>
    %cst_6 = arith.constant dense<0.000000e+00> : vector<2xf32>
    %21 = vector.multi_reduction <add>, %20, %cst_6 [1] : vector<2x256xf32> to vector<2xf32>
    %22 = vector.shape_cast %21 : vector<2xf32> to vector<2x1xf32>
    %cst_7 = arith.constant 0.00617283955 : f32
    %23 = vector.broadcast %cst_7 : f32 to vector<2x1xf32>
    %24 = arith.mulf %22, %23 : vector<2x1xf32>
    %cst_8 = arith.constant 9.99999974E-6 : f32
    %25 = vector.broadcast %cst_8 : f32 to vector<2x1xf32>
    %26 = arith.addf %24, %25 : vector<2x1xf32>
    %27 = math.rsqrt %26 : vector<2x1xf32>
    %28 = arith.mulf %2, %27 : vector<2x1xf32>
    %29 = arith.mulf %15, %28 : vector<2x1xf32>
    %30 = arith.subf %3, %29 : vector<2x1xf32>
    %31 = vector.broadcast %28 : vector<2x1xf32> to vector<2x256xf32>
    %32 = arith.mulf %6, %31 : vector<2x256xf32>
    %33 = vector.broadcast %30 : vector<2x1xf32> to vector<2x256xf32>
    %34 = arith.addf %32, %33 : vector<2x256xf32>
    %cst_9 = arith.constant 0.000000e+00 : f32
    %35 = vector.broadcast %cst_9 : f32 to vector<2x256xf32>
    %36 = arith.maximumf %34, %35 : vector<2x256xf32>
    %37 = vector.broadcast %4 : vector<2x1xf32> to vector<2x256xf32>
    %38 = arith.mulf %36, %37 : vector<2x256xf32>
    %cst_10 = arith.constant dense<0.000000e+00> : vector<256xf32>
    %39 = vector.multi_reduction <add>, %38, %cst_10 [0] : vector<2x256xf32> to vector<256xf32>
    %40 = vector.shape_cast %39 : vector<256xf32> to vector<1x256xf32>
    %41 = tpu.iota {dimensions = array<i32: 1>} : vector<1x128xi32>
    %42 = arith.sitofp %41 : vector<1x128xi32> to vector<1x128xf32>
    %cst_11 = arith.constant 5.000000e-01 : f32
    %43 = vector.broadcast %cst_11 : f32 to vector<1x128xf32>
    %44 = arith.addf %42, %43 : vector<1x128xf32>
    %cst_12 = arith.constant 0.0204081628 : f32
    %45 = vector.broadcast %cst_12 : f32 to vector<1x128xf32>
    %46 = arith.mulf %44, %45 : vector<1x128xf32>
    %47 = math.floor %46 : vector<1x128xf32>
    %48 = arith.fptosi %47 : vector<1x128xf32> to vector<1x128xi32>
    %c49_i32 = arith.constant 49 : i32
    %49 = vector.broadcast %c49_i32 : i32 to vector<1x128xi32>
    %50 = arith.muli %48, %49 : vector<1x128xi32>
    %51 = arith.subi %41, %50 : vector<1x128xi32>
    %52 = arith.sitofp %51 : vector<1x128xi32> to vector<1x128xf32>
    %cst_13 = arith.constant 5.000000e-01 : f32
    %53 = vector.broadcast %cst_13 : f32 to vector<1x128xf32>
    %54 = arith.addf %52, %53 : vector<1x128xf32>
    %cst_14 = arith.constant 0.142857149 : f32
    %55 = vector.broadcast %cst_14 : f32 to vector<1x128xf32>
    %56 = arith.mulf %54, %55 : vector<1x128xf32>
    %57 = math.floor %56 : vector<1x128xf32>
    %58 = arith.fptosi %57 : vector<1x128xf32> to vector<1x128xi32>
    %c7_i32 = arith.constant 7 : i32
    %59 = vector.broadcast %c7_i32 : i32 to vector<1x128xi32>
    %60 = arith.muli %58, %59 : vector<1x128xi32>
    %61 = arith.subi %51, %60 : vector<1x128xi32>
    %c2_i32 = arith.constant 2 : i32
    %62 = vector.broadcast %c2_i32 : i32 to vector<1x128xi32>
    %63 = arith.muli %62, %58 : vector<1x128xi32>
    %c2_i32_15 = arith.constant 2 : i32
    %64 = vector.broadcast %c2_i32_15 : i32 to vector<1x128xi32>
    %65 = arith.subi %63, %64 : vector<1x128xi32>
    %c2_i32_16 = arith.constant 2 : i32
    %66 = vector.broadcast %c2_i32_16 : i32 to vector<1x128xi32>
    %67 = arith.muli %66, %61 : vector<1x128xi32>
    %c2_i32_17 = arith.constant 2 : i32
    %68 = vector.broadcast %c2_i32_17 : i32 to vector<1x128xi32>
    %69 = arith.subi %67, %68 : vector<1x128xi32>
    %c81_i32 = arith.constant 81 : i32
    %70 = vector.broadcast %c81_i32 : i32 to vector<1x128xi32>
    %71 = arith.muli %48, %70 : vector<1x128xi32>
    %c9_i32 = arith.constant 9 : i32
    %72 = vector.broadcast %c9_i32 : i32 to vector<1x128xi32>
    %73 = arith.muli %65, %72 : vector<1x128xi32>
    %74 = arith.addi %71, %73 : vector<1x128xi32>
    %75 = arith.addi %74, %69 : vector<1x128xi32>
    %c98_i32 = arith.constant 98 : i32
    %76 = vector.broadcast %c98_i32 : i32 to vector<1x128xi32>
    %77 = arith.cmpi slt, %41, %76 : vector<1x128xi32>
    %c0_i32 = arith.constant 0 : i32
    %78 = vector.broadcast %c0_i32 : i32 to vector<1x128xi32>
    %79 = arith.cmpi sge, %65, %78 : vector<1x128xi32>
    %80 = arith.andi %77, %79 : vector<1x128xi1>
    %c9_i32_18 = arith.constant 9 : i32
    %81 = vector.broadcast %c9_i32_18 : i32 to vector<1x128xi32>
    %82 = arith.cmpi slt, %65, %81 : vector<1x128xi32>
    %83 = arith.andi %80, %82 : vector<1x128xi1>
    %c0_i32_19 = arith.constant 0 : i32
    %84 = vector.broadcast %c0_i32_19 : i32 to vector<1x128xi32>
    %85 = arith.cmpi sge, %69, %84 : vector<1x128xi32>
    %86 = arith.andi %83, %85 : vector<1x128xi1>
    %c9_i32_20 = arith.constant 9 : i32
    %87 = vector.broadcast %c9_i32_20 : i32 to vector<1x128xi32>
    %88 = arith.cmpi slt, %69, %87 : vector<1x128xi32>
    %89 = arith.andi %86, %88 : vector<1x128xi1>
    %90 = tpu.iota {dimensions = array<i32: 0>} : vector<256x128xi32>
    %91 = vector.broadcast %75 : vector<1x128xi32> to vector<256x128xi32>
    %92 = arith.cmpi eq, %90, %91 : vector<256x128xi32>
    %93 = vector.broadcast %89 : vector<1x128xi1> to vector<256x128xi1>
    %94 = arith.andi %92, %93 : vector<256x128xi1>
    %cst_21 = arith.constant 1.000000e+00 : f32
    %cst_22 = arith.constant 0.000000e+00 : f32
    %95 = vector.broadcast %cst_21 : f32 to vector<256x128xf32>
    %96 = vector.broadcast %cst_22 : f32 to vector<256x128xf32>
    %97 = arith.select %94, %95, %96 : vector<256x128xi1>, vector<256x128xf32>
    %cst_23 = arith.constant dense<0.000000e+00> : vector<1x128xf32>
    %98 = tpu.matmul %40, %97, %cst_23 {dimension_numbers = #tpu.dot_dimension_numbers<[1], [0], [0], [1], [0, 0, 1, 1], [], []>} : vector<1x256xf32>, vector<256x128xf32>, vector<1x128xf32> -> vector<1x128xf32>
    %c0_24 = arith.constant 0 : index
    %c0_25 = arith.constant 0 : index
    %99 = vector.load %arg3[%c0_24, %c0_25] : memref<1x128xf32, #tpu.memory_space<vmem>>, vector<1x128xf32>
    tpu.vector_store %arg3[%c0_24, %c0_25], %98 {strides = array<i32>} : memref<1x128xf32, #tpu.memory_space<vmem>>, vector<1x128xf32>,
    return
  }
  func.func @transform_0(%arg0: i32) -> (i32, i32) {
    %c0_i32 = arith.constant 0 : i32
    %c0_i32_0 = arith.constant 0 : i32
    %c0_i32_1 = arith.constant 0 : i32
    return %c0_i32, %c0_i32_0 : i32, i32
  }
  func.func @transform_1(%arg0: i32) -> (i32, i32) {
    %c0_i32 = arith.constant 0 : i32
    %c0_i32_0 = arith.constant 0 : i32
    %c0_i32_1 = arith.constant 0 : i32
    return %c0_i32, %c0_i32_0 : i32, i32
  }
  func.func @transform_2(%arg0: i32) -> (i32, i32) {
    %c0_i32 = arith.constant 0 : i32
    %c0_i32_0 = arith.constant 0 : i32
    %c0_i32_1 = arith.constant 0 : i32
    return %c0_i32, %c0_i32_0 : i32, i32
  }
}

</mosaic_0001>

<bundles_post_ra>
// kernel: squeeze.0
= control target key start
LH: loop header
LB: loop body
LE: loop exit
PB: predicated region body
PF: predicated region fallthrough
CT: control target
= control target key end

     0   :  { %s289_s0 = inlined_call_operand.vmem [shape: f32[98], index: 0, kind: input, shape index: {}]   ;;  %s290_s1 = inlined_call_operand.hbm [shape: f32[2,1,7,7], index: 1, kind: output, shape index: {}]  }
   0x1   :  { %v6_v0 = vld [vmem:[%s289_s0] sm:$0x1] }
   0x2   :  { %7 = vst [vmem:[#allocation3] sm:$0x1] %v6_v0 }
   0x3   :  { %2 = vsyncpa [#allocation1], 0  ;;  %s245_s0 = smov 121   ;;  %s246_s8 = smov 107   ;;  %vm9_vm0 = vcmask 56320  }
   0x4   :  { %s247_s9 = smov 114   ;;  %s248_s10 = smov 100  }
   0x5   :  { %s249_s11 = smov 93   ;;  %s250_s12 = smov 86  }
   0x6   :  { %s251_s13 = smov 79   ;;  %s252_s14 = smov 72  }
   0x7   :  { %s253_s15 = smov 65   ;;  %s254_s16 = smov 58  }
   0x8   :  { %s255_s17 = smov 51   ;;  %s256_s18 = smov 44  }
   0x9   :  { %v11_v1 = vld [vmem:[#allocation3] sm:$0x1]   ;;  %s257_s19 = smov 37   ;;  %s258_s20 = smov [#allocation0]  }
   0xa   :  { %v23_v2 = vld [vmem:[#allocation3] sm:$0x1]   ;;  %12 = vrot.lane.b32.xlu0 %v11_v1, %s245_s0  ;;  %s191_s21 = sshll.u32 %s258_s20, 4  ;;  %s192_s21 = int_to_ptr.vmem [resolvable:$true] %s191_s21 }
   0xb   :  { %24 = vrot.lane.b32.xlu1 %v23_v2, %s246_s8  ;;  %v17_v3 = vld [vmem:[#allocation3] sm:$0x1]   ;;  %s223_s22 = scalar_lea.vmem %s192_s21, 224  ;;  %p228_p1 = scmp.lt.s32.totalorder %s192_s21, %s192_s21 }
   0xc   :  { %v29_v4 = vld [vmem:[#allocation3] sm:$0x1]   ;;  %p224_p0 = scmp.ne.s32.totalorder %s192_s21, %s223_s22  ;;  %p229_p2 = scmp.lt.s32.totalorder %s223_s22, %s223_s22 }
   0xd   :  { %v35_v5 = vld [vmem:[#allocation3] sm:$0x1]  }
   0xe   :  { %18 = vrot.lane.b32.xlu0 %v17_v3, %s247_s9  ;;  %v41_v6 = vld [vmem:[#allocation3] sm:$0x1]   ;;  %p230_p3 = por %p229_p2, %p228_p1 }
   0xf   :  { %30 = vrot.lane.b32.xlu1 %v29_v4, %s248_s10  ;;  %v47_v7 = vld [vmem:[#allocation3] sm:$0x1]  }
  0x10   :  { %v53_v8 = vld [vmem:[#allocation3] sm:$0x1]   ;;  %p231_p4 = pnand %p230_p3, %p224_p0 }
  0x11   :  { %v8_v9 = vld [vmem:[#allocation3] sm:$0x1]  }
  0x12   :  { %36 = vrot.lane.b32.xlu0 %v35_v5, %s249_s11  ;;  %10 = vst.msk [vmem:[#allocation2] sm:$0x1] %vm9_vm0, %v8_v9   ;;  %v59_v10 = vld [vmem:[#allocation3] sm:$0x1]  }
  0x13   :  { %42 = vrot.lane.b32.xlu1 %v41_v6, %s250_s12  ;;  %v65_v11 = vld [vmem:[#allocation3] sm:$0x1]  }
  0x14   :  { %v71_v12 = vld [vmem:[#allocation3] sm:$0x1]  }
  0x15   :  { %v77_v13 = vld [vmem:[#allocation3] sm:$0x1]  }
  0x16   :  { %48 = vrot.lane.b32.xlu0 %v47_v7, %s251_s13  ;;  %v83_v15 = vld [vmem:[#allocation3] sm:$0x1]  }
  0x17   :  { %54 = vrot.lane.b32.xlu1 %v53_v8, %s252_s14 }
  0x19   :  { %v93_v14 = vld [vmem:[#allocation2] sm:$0x1] }
  0x1a   :  { %60 = vrot.lane.b32.xlu0 %v59_v10, %s253_s15  ;;  %96 = vst [vmem:[#allocation0] sm:$0x1] %v93_v14 }
  0x1b   :  { %66 = vrot.lane.b32.xlu1 %v65_v11, %s254_s16 }
  0x1e   :  { %72 = vrot.lane.b32.xlu0 %v71_v12, %s255_s17 }
  0x1f   :  { %78 = vrot.lane.b32.xlu1 %v77_v13, %s256_s18 }
  0x22   :  { %84 = vrot.lane.b32.xlu0 %v83_v15, %s257_s19 }
  0x7c   :  { %v13_v16 = vpop.permute.xlu0 %12  }
  0x7d   :  { %v25_v17 = vpop.permute.xlu1 %24   ;;  %16 = vst.msk [vmem:[#allocation2 + $0x8] sm:$0x1] %vm9_vm0, %v13_v16  }
  0x7e   :  { %28 = vst.msk [vmem:[#allocation2 + $0x18] sm:$0x1] %vm9_vm0, %v25_v17  }
  0x80   :  { %v19_v18 = vpop.permute.xlu0 %18  }
  0x81   :  { %v31_v19 = vpop.permute.xlu1 %30   ;;  %22 = vst.msk [vmem:[#allocation2 + $0x10] sm:$0x1] %vm9_vm0, %v19_v18  }
  0x82   :  { %34 = vst.msk [vmem:[#allocation2 + $0x20] sm:$0x1] %vm9_vm0, %v31_v19  }
  0x84   :  { %v98_v20 = vld [vmem:[#allocation2 + $0x8] sm:$0x1]  ;;  %v37_v22 = vpop.permute.xlu0 %36  }
  0x85   :  { %v111_v21 = vld [vmem:[#allocation2 + $0x18] sm:$0x1]  ;;  %v43_v23 = vpop.permute.xlu1 %42   ;;  %102 = vst [vmem:[#allocation0 + $0x1] sm:$0x1] %v98_v20  ;;  %40 = vst.msk [vmem:[#allocation2 + $0x28] sm:$0x1] %vm9_vm0, %v37_v22  }
  0x86   :  { %116 = vst [vmem:[#allocation0 + $0x3] sm:$0x1] %v111_v21  ;;  %46 = vst.msk [vmem:[#allocation2 + $0x30] sm:$0x1] %vm9_vm0, %v43_v23  }
  0x88   :  { %v104_v24 = vld [vmem:[#allocation2 + $0x10] sm:$0x1]  ;;  %v49_v26 = vpop.permute.xlu0 %48  }
  0x89   :  { %v118_v25 = vld [vmem:[#allocation2 + $0x20] sm:$0x1]  ;;  %v55_v27 = vpop.permute.xlu1 %54   ;;  %109 = vst [vmem:[#allocation0 + $0x2] sm:$0x1] %v104_v24  ;;  %52 = vst.msk [vmem:[#allocation2 + $0x38] sm:$0x1] %vm9_vm0, %v49_v26  }
  0x8a   :  { %123 = vst [vmem:[#allocation0 + $0x4] sm:$0x1] %v118_v25  ;;  %58 = vst.msk [vmem:[#allocation2 + $0x40] sm:$0x1] %vm9_vm0, %v55_v27  }
  0x8c   :  { %v125_v28 = vld [vmem:[#allocation2 + $0x28] sm:$0x1]  ;;  %v61_v30 = vpop.permute.xlu0 %60  }
  0x8d   :  { %v132_v29 = vld [vmem:[#allocation2 + $0x30] sm:$0x1]  ;;  %v67_v31 = vpop.permute.xlu1 %66   ;;  %130 = vst [vmem:[#allocation0 + $0x5] sm:$0x1] %v125_v28  ;;  %64 = vst.msk [vmem:[#allocation2 + $0x48] sm:$0x1] %vm9_vm0, %v61_v30  }
  0x8e   :  { %137 = vst [vmem:[#allocation0 + $0x6] sm:$0x1] %v132_v29  ;;  %70 = vst.msk [vmem:[#allocation2 + $0x50] sm:$0x1] %vm9_vm0, %v67_v31  }
  0x90   :  { %v139_v32 = vld [vmem:[#allocation2 + $0x38] sm:$0x1]  ;;  %v73_v34 = vpop.permute.xlu0 %72  }
  0x91   :  { %v146_v33 = vld [vmem:[#allocation2 + $0x40] sm:$0x1]  ;;  %v79_v35 = vpop.permute.xlu1 %78   ;;  %144 = vst [vmem:[#allocation0 + $0x7] sm:$0x1] %v139_v32  ;;  %76 = vst.msk [vmem:[#allocation2 + $0x58] sm:$0x1] %vm9_vm0, %v73_v34  }
  0x92   :  { %151 = vst [vmem:[#allocation0 + $0x8] sm:$0x1] %v146_v33  ;;  %82 = vst.msk [vmem:[#allocation2 + $0x60] sm:$0x1] %vm9_vm0, %v79_v35  }
  0x94   :  { %v153_v36 = vld [vmem:[#allocation2 + $0x48] sm:$0x1]  ;;  %v85_v38 = vpop.permute.xlu0 %84  }
  0x95   :  { %v160_v37 = vld [vmem:[#allocation2 + $0x50] sm:$0x1]  ;;  %158 = vst [vmem:[#allocation0 + $0x9] sm:$0x1] %v153_v36  ;;  %88 = vst.msk [vmem:[#allocation2 + $0x68] sm:$0x1] %vm9_vm0, %v85_v38  }
  0x96   :  { %165 = vst [vmem:[#allocation0 + $0xa] sm:$0x1] %v160_v37 }
  0x98   :  { %v167_v39 = vld [vmem:[#allocation2 + $0x58] sm:$0x1] }
  0x99   :  { %v174_v40 = vld [vmem:[#allocation2 + $0x60] sm:$0x1]  ;;  %172 = vst [vmem:[#allocation0 + $0xb] sm:$0x1] %v167_v39 }
  0x9a   :  { %179 = vst [vmem:[#allocation0 + $0xc] sm:$0x1] %v174_v40 }
  0x9c   :  { %v181_v41 = vld [vmem:[#allocation2 + $0x68] sm:$0x1] }
  0x9d   :  { %186 = vst [vmem:[#allocation0 + $0xd] sm:$0x1] %v181_v41 }
  0x9e   :  { %234 = shalt.err (!%p231_p4)
}
  0x9f   :  { %194 = dma.vmem_to_hbm [thread:$0]  %s192_s21, 224, %s290_s1, [#allocation1]  }
  0xa0   :  { %243 = dma.done.wait [#allocation1], 224  }
  0xa1   :  { %244 = vsyncadd [#allocation1], 4294967072 }
  0xa2   :  { %196 = vsyncpa [#allocation1], 1 }

// kernel: classifier_head_forward.1
= control target key start
LH: loop header
LB: loop body
LE: loop exit
PB: predicated region body
PF: predicated region fallthrough
CT: control target
= control target key end

     0   :  { %v503_v3 = vmov 0.0   ;;  %vm30_vm0 = vcmask 588800   ;;  %vm114_vm1 = vcmask 1041408   ;;  %v105_v25 = vlaneseq  ;;  %s776_s0 = inlined_call_operand.vmem [shape: f32[72,256], index: 0, kind: input, shape index: {}]   ;;  %s777_s1 = inlined_call_operand.vmem [shape: f32[2,75], index: 1, kind: input, shape index: {}]   ;;  %s778_s2 = inlined_call_operand.vmem [shape: f32[1,128], index: 2, kind: output, shape index: {}]  }
   0x1   :  { %v29_v0 = vld [vmem:[%s776_s0 + $0x88] sm:$0xff]  ;;  %v28_v1 = vld [vmem:[%s776_s0 + $0x80] sm:$0xff]  ;;  %v27_v2 = vld [vmem:[%s776_s0 + $0x78] sm:$0xff]  ;;  %98 = vmatprep.mubr.f32.mxu0 %v503_v3  ;;  %v504_v39 = vmov 72   ;;  %v505_v63 = vmov 73  }
   0x2   :  { %48 = vmatprep.subr.mxu0 %v29_v0  ;;  %v26_v4 = vld [vmem:[%s776_s0 + $0x70] sm:$0xff]  ;;  %v25_v5 = vld [vmem:[%s776_s0 + $0x68] sm:$0xff]  ;;  %v24_v6 = vld [vmem:[%s776_s0 + $0x60] sm:$0xff]  ;;  %v106_v26 = vand.u32 127, %v105_v25  ;;  %497 = vset.pattern.permute.xlu1 %v504_v39 }
   0x3   :  { %49 = vmatpush1.msra.mxu0 %v28_v1  ;;  %v23_v7 = vld [vmem:[%s776_s0 + $0x58] sm:$0xff]  ;;  %v22_v8 = vld [vmem:[%s776_s0 + $0x50] sm:$0xff]  ;;  %v21_v9 = vld [vmem:[%s776_s0 + $0x48] sm:$0xff]  ;;  %498 = vset.pattern.permute.xlu0 %v505_v63 }
   0x4   :  { %50 = vmatprep.subr.mxu0 %v27_v2  ;;  %v20_v10 = vld [vmem:[%s776_s0 + $0x40] sm:$0xff]  ;;  %v19_v11 = vld [vmem:[%s776_s0 + $0x38] sm:$0xff]  ;;  %v18_v12 = vld [vmem:[%s776_s0 + $0x30] sm:$0xff]  ;;  %v107_v27 = vadd.s32 128, %v106_v26  ;;  %v178_v40 = vcvt.s32.f32 %v106_v26  ;;  %vm200_vm3 = vcmp.lt.s32.totalorder %v106_v26, 98 }
   0x5   :  { %51 = vmatpush1.msra.mxu0 %v26_v4  ;;  %v17_v13 = vld [vmem:[%s776_s0 + $0x28] sm:$0xff]  ;;  %v16_v14 = vld [vmem:[%s776_s0 + $0x20] sm:$0xff]  ;;  %v15_v15 = vld [vmem:[%s776_s0 + $0x18] sm:$0xff]  ;;  %v597_v4 = vshrl.u32 %v105_v25, 7 }
   0x6   :  { %52 = vmatprep.subr.mxu0 %v25_v5  ;;  %v14_v16 = vld [vmem:[%s776_s0 + $0x10] sm:$0xff]  ;;  %v13_v17 = vld [vmem:[%s776_s0 + $0x8] sm:$0xff]  ;;  %v12_v18 = vld [vmem:[%s776_s0] sm:$0xff]  ;;  %vm109_vm2 = vcmp.lt.s32.totalorder %v107_v27, 162  ;;  %v179_v41 = vadd.f32 0.5, %v178_v40  ;;  %s507_s0 = smov 1  }
   0x7   :  { %53 = vmatpush1.msra.mxu0 %v24_v6  ;;  %v582_v19 = vld [vmem:[%s777_s1] sm:$0x3]  ;;  %v416_v30 = vsel %vm109_vm2, 1.0, %v503_v3  ;;  %v506_v6 = vmov 0   ;;  %v220_v25 = vadd.s32 80, %v597_v4  ;;  %v235_v27 = vadd.s32 200, %v597_v4 }
   0x8   :  { %54 = vmatprep.subr.mxu0 %v23_v7  ;;  %v180_v42 = vmul.f32 0.020408163, %v179_v41  ;;  %v214_v39 = vadd.s32 32, %v597_v4  ;;  %v229_v40 = vadd.s32 152, %v597_v4  ;;  %v213_v41 = vadd.s32 24, %v597_v4 }
   0x9   :  { %55 = vmatpush1.msra.mxu0 %v22_v8 }
   0xa   :  { %56 = vmatprep.subr.mxu0 %v21_v9  ;;  %v181_v43 = vfloor.f32 %v180_v42  ;;  %v228_v42 = vadd.s32 144, %v597_v4 }
   0xb   :  { %57 = vmatpush1.msra.mxu0 %v20_v10  ;;  %v241_v10 = vadd.s32 248, %v597_v4 }
   0xc   :  { %58 = vmatprep.subr.mxu0 %v19_v11  ;;  %v486_v44 = vtrunc.f32 %v181_v43  ;;  %v225_v11 = vadd.s32 120, %v597_v4  ;;  %v212_v43 = vadd.s32 16, %v597_v4 }
   0xd   :  { %59 = vmatpush1.msra.mxu0 %v18_v12  ;;  %v240_v12 = vadd.s32 240, %v597_v4 }
   0xe   :  { %60 = vmatprep.subr.mxu0 %v17_v13  ;;  %v487_v45 = vcvt.f32.s32 %v486_v44  ;;  %v224_v13 = vadd.s32 112, %v597_v4  ;;  %v227_v44 = vadd.s32 136, %v597_v4 }
   0xf   :  { %61 = vmatpush1.msra.mxu0 %v16_v14  ;;  %v239_v14 = vadd.s32 232, %v597_v4 }
  0x10   :  { %62 = vmatprep.subr.mxu0 %v15_v15  ;;  %v183_v46 = vmul.u32 49, %v487_v45  ;;  %v196_v0 = vmul.u32 81, %v487_v45  ;;  %v223_v15 = vadd.s32 104, %v597_v4  ;;  %v211_v45 = vadd.s32 8, %v597_v4 }
  0x11   :  { %63 = vmatpush1.msra.mxu0 %v14_v16  ;;  %v238_v16 = vadd.s32 224, %v597_v4 }
  0x12   :  { %64 = vmatprep.subr.mxu0 %v13_v17  ;;  %v184_v47 = vsub.s32 %v106_v26, %v183_v46  ;;  %v222_v17 = vadd.s32 96, %v597_v4  ;;  %v509_v26 = vmov 74   ;;  %v226_v46 = vadd.s32 128, %v597_v4 }
  0x13   :  { %65 = vmatpush1.msra.mxu0 %v12_v18  ;;  %v508_v18 = vmov 1.0  }
  0x14   :  { %415 = vmatmul.mubr.msk.f32.vlgmr.msra.gmra.mxu0 %vm30_vm0, %v582_v19  ;;  %v185_v48 = vcvt.s32.f32 %v184_v47 }
  0x16   :  { %v186_v49 = vadd.f32 0.5, %v185_v48 }
  0x18   :  { %v187_v50 = vmul.f32 0.14285715, %v186_v49 }
  0x1a   :  { %v188_v51 = vfloor.f32 %v187_v50 }
  0x1c   :  { %v488_v52 = vtrunc.f32 %v188_v51 }
  0x1e   :  { %v489_v53 = vcvt.f32.s32 %v488_v52 }
  0x20   :  { %v190_v54 = vmul.u32 7, %v489_v53  ;;  %v192_v55 = vmul.u32 2, %v489_v53 }
  0x22   :  { %v191_v56 = vsub.s32 %v184_v47, %v190_v54  ;;  %v417_v58 = vadd.s32 4294967294, %v192_v55 }
  0x24   :  { %v194_v60 = vmul.u32 2, %v191_v56  ;;  %vm201_vm4 = vcmp.ge.s32.totalorder %v417_v58, 0  ;;  %vm203_vm6 = vcmp.lt.s32.totalorder %v417_v58, 9  ;;  %v197_v1 = vmul.u32 9, %v417_v58 }
  0x25   :  { %vm202_vm5 = vmand %vm200_vm3, %vm201_vm4 }
  0x26   :  { %v418_v62 = vadd.s32 4294967294, %v194_v60  ;;  %vm204_vm7 = vmand %vm202_vm5, %vm203_vm6  ;;  %v198_v2 = vadd.s32 %v197_v1, %v196_v0 }
  0x28   :  { %vm205_vm8 = vcmp.ge.s32.totalorder %v418_v62, 0  ;;  %vm207_vm10 = vcmp.lt.s32.totalorder %v418_v62, 9  ;;  %v602_v8 = vadd.s32 %v418_v62, %v198_v2 }
  0x29   :  { %vm206_vm9 = vmand %vm204_vm7, %vm205_vm8 }
  0x2a   :  { %vm208_vm11 = vmand %vm206_vm9, %vm207_vm10  ;;  %vm273_vm13 = vcmp.eq.s32.totalorder %v241_v10, %v602_v8  ;;  %vm257_vm14 = vcmp.eq.s32.totalorder %v225_v11, %v602_v8  ;;  %vm272_vm15 = vcmp.eq.s32.totalorder %v240_v12, %v602_v8  ;;  %vm256_vm2 = vcmp.eq.s32.totalorder %v224_v13, %v602_v8 }
  0x2b   :  { %v600_v7 = vsel %vm208_vm11, 1, %v506_v6  ;;  %vm271_vm4 = vcmp.eq.s32.totalorder %v239_v14, %v602_v8  ;;  %vm255_vm6 = vcmp.eq.s32.totalorder %v223_v15, %v602_v8  ;;  %vm270_vm8 = vcmp.eq.s32.totalorder %v238_v16, %v602_v8 }
  0x2c   :  { %vm275_vm12 = vcmp.eq.s32.totalorder %v600_v7, 1  ;;  %vm254_vm10 = vcmp.eq.s32.totalorder %v222_v17, %v602_v8 }
  0x2d   :  { %vm307_vm0 = vmand %vm273_vm13, %vm275_vm12 }
  0x2e   :  { %451 = vmatprep.subr.msk.mxu1 %vm307_vm0, %v508_v18  ;;  %vm291_vm3 = vmand %vm257_vm14, %vm275_vm12 }
  0x2f   :  { %452 = vmatpush3.msk.msra.mxu1 %vm291_vm3, %v508_v18  ;;  %vm306_vm5 = vmand %vm272_vm15, %vm275_vm12 }
  0x30   :  { %453 = vmatprep.subr.msk.mxu1 %vm306_vm5, %v508_v18  ;;  %vm290_vm7 = vmand %vm256_vm2, %vm275_vm12 }
  0x31   :  { %454 = vmatpush3.msk.msra.mxu1 %vm290_vm7, %v508_v18  ;;  %vm305_vm9 = vmand %vm271_vm4, %vm275_vm12  ;;  %vm252_vm4 = vcmp.eq.s32.totalorder %v220_v25, %v602_v8 }
  0x32   :  { %455 = vmatprep.subr.msk.mxu1 %vm305_vm9, %v508_v18  ;;  %vm289_vm11 = vmand %vm255_vm6, %vm275_vm12 }
  0x33   :  { %456 = vmatpush3.msk.msra.mxu1 %vm289_vm11, %v508_v18  ;;  %vm304_vm14 = vmand %vm270_vm8, %vm275_vm12  ;;  %vm267_vm8 = vcmp.eq.s32.totalorder %v235_v27, %v602_v8 }
  0x34   :  { %457 = vmatprep.subr.msk.mxu1 %vm304_vm14, %v508_v18  ;;  %vm288_vm0 = vmand %vm254_vm10, %vm275_vm12 }
  0x35   :  { %458 = vmatpush3.msk.msra.mxu1 %vm288_vm0, %v508_v18  ;;  %vm286_vm7 = vmand %vm252_vm4, %vm275_vm12 }
  0x36   :  { %vm301_vm9 = vmand %vm267_vm8, %vm275_vm12 }
  0xd4   :  { %v585_v20 = vpop.f32.mrf.mxu0 }
  0xd5   :  { %v115_v22 = vsel %vm114_vm1, %v585_v20, 0.0 }
  0xd6   :  { %v587_v21 = vpop.f32.mrf.mxu0 }
  0xd7   :  { %v116_v23 = vsel %vm114_vm1, %v587_v21, 0.0 }
  0xd8   :  { %v117_v24 = vadd.f32 %v116_v23, %v115_v22  ;;  %v237_v22 = vadd.s32 216, %v597_v4  ;;  %v221_v23 = vadd.s32 88, %v597_v4 }
  0xda   :  { %118 = vadd.xlane.f32.xlu0 %v117_v24  ;;  %v236_v24 = vadd.s32 208, %v597_v4  ;;  %vm269_vm13 = vcmp.eq.s32.totalorder %v237_v22, %v602_v8  ;;  %vm253_vm15 = vcmp.eq.s32.totalorder %v221_v23, %v602_v8 }
  0xdb   :  { %vm303_vm3 = vmand %vm269_vm13, %vm275_vm12 }
  0xdc   :  { %vm268_vm2 = vcmp.eq.s32.totalorder %v236_v24, %v602_v8  ;;  %459 = vmatprep.subr.msk.mxu1 %vm303_vm3, %v508_v18  ;;  %vm287_vm5 = vmand %vm253_vm15, %vm275_vm12 }
  0xdd   :  { %460 = vmatpush3.msk.msra.mxu1 %vm287_vm5, %v508_v18  ;;  %vm302_vm6 = vmand %vm268_vm2, %vm275_vm12 }
  0xde   :  { %461 = vmatprep.subr.msk.mxu1 %vm302_vm6, %v508_v18 }
  0xdf   :  { %462 = vmatpush3.msk.msra.mxu1 %vm286_vm7, %v508_v18 }
  0xe0   :  { %463 = vmatprep.subr.msk.mxu1 %vm301_vm9, %v508_v18 }
 0x163   :  { %v119_v28 = vpop.xlane.xlu0 %118 }
 0x164   :  { %v120_v29 = vmul.f32 0.0061728396, %v119_v28  ;;  %v219_v28 = vadd.s32 72, %v597_v4 }
 0x166   :  { %v122_v31 = vsub.f32 %v587_v21, %v120_v29  ;;  %v121_v32 = vsub.f32 %v585_v20, %v120_v29  ;;  %vm251_vm10 = vcmp.eq.s32.totalorder %v219_v28, %v602_v8 }
 0x167   :  { %vm285_vm11 = vmand %vm251_vm10, %vm275_vm12 }
 0x168   :  { %v124_v33 = vmul.f32 %v416_v30, %v122_v31  ;;  %v125_v34 = vmul.f32 %v121_v32, %v121_v32  ;;  %v218_v30 = vadd.s32 64, %v597_v4  ;;  %v233_v31 = vadd.s32 184, %v597_v4  ;;  %464 = vmatpush3.msk.msra.mxu1 %vm285_vm11, %v508_v18 }
 0x16a   :  { %v126_v35 = vmul.f32 %v124_v33, %v124_v33  ;;  %v127_v36 = vsel %vm114_vm1, %v125_v34, 0.0  ;;  %vm250_vm15 = vcmp.eq.s32.totalorder %v218_v30, %v602_v8  ;;  %v217_v33 = vadd.s32 56, %v597_v4 }
 0x16b   :  { %vm284_vm0 = vmand %vm250_vm15, %vm275_vm12  ;;  %vm265_vm2 = vcmp.eq.s32.totalorder %v233_v31, %v602_v8 }
 0x16c   :  { %v128_v37 = vsel %vm114_vm1, %v126_v35, 0.0  ;;  %v232_v35 = vadd.s32 176, %v597_v4  ;;  %vm299_vm3 = vmand %vm265_vm2, %vm275_vm12  ;;  %vm249_vm4 = vcmp.eq.s32.totalorder %v217_v33, %v602_v8  ;;  %vm246_vm2 = vcmp.eq.s32.totalorder %v214_v39, %v602_v8 }
 0x16d   :  { %v129_v38 = vadd.f32 %v128_v37, %v127_v36  ;;  %v216_v36 = vadd.s32 48, %v597_v4  ;;  %vm283_vm5 = vmand %vm249_vm4, %vm275_vm12  ;;  %v215_v37 = vadd.s32 40, %v597_v4  ;;  %vm261_vm4 = vcmp.eq.s32.totalorder %v229_v40, %v602_v8 }
 0x16e   :  { %vm264_vm6 = vcmp.eq.s32.totalorder %v232_v35, %v602_v8 }
 0x16f   :  { %130 = vadd.xlane.f32.xlu0 %v129_v38  ;;  %vm298_vm7 = vmand %vm264_vm6, %vm275_vm12  ;;  %vm248_vm8 = vcmp.eq.s32.totalorder %v216_v36, %v602_v8  ;;  %v230_v38 = vadd.s32 160, %v597_v4  ;;  %vm245_vm6 = vcmp.eq.s32.totalorder %v213_v41, %v602_v8 }
 0x170   :  { %vm282_vm9 = vmand %vm248_vm8, %vm275_vm12  ;;  %vm260_vm8 = vcmp.eq.s32.totalorder %v228_v42, %v602_v8 }
 0x171   :  { %vm262_vm15 = vcmp.eq.s32.totalorder %v230_v38, %v602_v8 }
 0x1f8   :  { %v131_v57 = vpop.xlane.xlu0 %130 }
 0x1f9   :  { %v132_v59 = vmul.f32 0.0061728396, %v131_v57 }
 0x1fb   :  { %v133_v61 = vadd.f32 1e-05, %v132_v59 }
 0x1fd   :  { %501 = vrsqrt.f32 %v133_v61 }
 0x20a   :  { %v502_v3 = vpop.eup %501 }
 0x20b   :  { %v135_v5 = vmul.f32 %v502_v3, %v582_v19 }
 0x20d   :  { %v136_v9 = vmul.f32 %v135_v5, %v120_v29  ;;  %v234_v29 = vadd.s32 192, %v597_v4 }
 0x20f   :  { %138 = vrot.lane.b32.xlu1 %v136_v9, %s507_s0  ;;  %vm266_vm13 = vcmp.eq.s32.totalorder %v234_v29, %v602_v8 }
 0x210   :  { %vm300_vm14 = vmand %vm266_vm13, %vm275_vm12  ;;  %vm247_vm13 = vcmp.eq.s32.totalorder %v215_v37, %v602_v8 }
 0x211   :  { %465 = vmatprep.subr.msk.mxu1 %vm300_vm14, %v508_v18  ;;  %vm281_vm14 = vmand %vm247_vm13, %vm275_vm12  ;;  %vm259_vm13 = vcmp.eq.s32.totalorder %v227_v44, %v602_v8 }
 0x212   :  { %466 = vmatpush3.msk.msra.mxu1 %vm284_vm0, %v508_v18  ;;  %vm296_vm0 = vmand %vm262_vm15, %vm275_vm12  ;;  %vm243_vm15 = vcmp.eq.s32.totalorder %v211_v45, %v602_v8 }
 0x213   :  { %144 = vperm.xlu1 %497, %v135_v5   ;;  %467 = vmatprep.subr.msk.mxu1 %vm299_vm3, %v508_v18  ;;  %vm280_vm3 = vmand %vm246_vm2, %vm275_vm12  ;;  %vm242_vm2 = vcmp.eq.s32.totalorder %v597_v4, %v602_v8 }
 0x214   :  { %468 = vmatpush3.msk.msra.mxu1 %vm283_vm5, %v508_v18  ;;  %vm295_vm5 = vmand %vm261_vm4, %vm275_vm12 }
 0x215   :  { %469 = vmatprep.subr.msk.mxu1 %vm298_vm7, %v508_v18  ;;  %vm279_vm7 = vmand %vm245_vm6, %vm275_vm12 }
 0x216   :  { %470 = vmatpush3.msk.msra.mxu1 %vm282_vm9, %v508_v18  ;;  %vm294_vm9 = vmand %vm260_vm8, %vm275_vm12 }
 0x217   :  { %499 = vset.pattern.permute.xlu1 %v509_v26 }
 0x218   :  { %159 = vperm.xlu1 %499, %v582_v19  }
 0x281   :  { %v139_v32 = vpop.permute.xlu1 %138 }
 0x282   :  { %v141_v34 = vsub.f32 %v582_v19, %v139_v32  ;;  %v231_v19 = vadd.s32 168, %v597_v4 }
 0x284   :  { %151 = vperm.xlu0 %498, %v141_v34   ;;  %vm263_vm10 = vcmp.eq.s32.totalorder %v231_v19, %v602_v8 }
 0x285   :  { %vm297_vm11 = vmand %vm263_vm10, %vm275_vm12  ;;  %vm244_vm10 = vcmp.eq.s32.totalorder %v212_v43, %v602_v8 }
 0x286   :  { %471 = vmatprep.subr.msk.mxu1 %vm297_vm11, %v508_v18  ;;  %vm278_vm11 = vmand %vm244_vm10, %vm275_vm12 }
 0x287   :  { %472 = vmatpush3.msk.msra.mxu1 %vm281_vm14, %v508_v18  ;;  %vm293_vm14 = vmand %vm259_vm13, %vm275_vm12 }
 0x288   :  { %500 = vset.pattern.permute.xlu0 %v509_v26  ;;  %473 = vmatprep.subr.msk.mxu1 %vm296_vm0, %v508_v18  ;;  %vm258_vm0 = vcmp.eq.s32.totalorder %v226_v46, %v602_v8 }
 0x289   :  { %474 = vmatpush3.msk.msra.mxu1 %vm280_vm3, %v508_v18  ;;  %vm277_vm3 = vmand %vm243_vm15, %vm275_vm12 }
 0x28a   :  { %475 = vmatprep.subr.msk.mxu1 %vm295_vm5, %v508_v18  ;;  %vm292_vm4 = vmand %vm258_vm0, %vm275_vm12 }
 0x28b   :  { %476 = vmatpush3.msk.msra.mxu1 %vm279_vm7, %v508_v18  ;;  %vm276_vm5 = vmand %vm242_vm2, %vm275_vm12 }
 0x28c   :  { %477 = vmatprep.subr.msk.mxu1 %vm294_vm9, %v508_v18 }
 0x28d   :  { %478 = vmatpush3.msk.msra.mxu1 %vm278_vm11, %v508_v18 }
 0x28e   :  { %479 = vmatprep.subr.msk.mxu1 %vm293_vm14, %v508_v18  ;;  %v145_v47 = vpop.permute.xlu1 %144 }
 0x28f   :  { %480 = vmatpush3.msk.msra.mxu1 %vm277_vm3, %v508_v18  ;;  %v147_v48 = vmul.f32 %v145_v47, %v585_v20  ;;  %v148_v49 = vmul.f32 %v145_v47, %v587_v21 }
 0x290   :  { %481 = vmatprep.subr.msk.mxu1 %vm292_vm4, %v508_v18 }
 0x291   :  { %482 = vmatpush3.msk.msra.mxu1 %vm276_vm5, %v508_v18 }
 0x293   :  { %v160_v53 = vpop.permute.xlu1 %159 }
 0x2ff   :  { %v152_v50 = vpop.permute.xlu0 %151 }
 0x300   :  { %v154_v51 = vadd.f32 %v152_v50, %v147_v48  ;;  %v155_v52 = vadd.f32 %v152_v50, %v148_v49 }
 0x302   :  { %v156_v54 = vmax.f32 %v154_v51, 0.0  ;;  %v157_v55 = vmax.f32 %v155_v52, 0.0 }
 0x304   :  { %v162_v56 = vmul.f32 %v160_v53, %v156_v54  ;;  %v163_v57 = vmul.f32 %v160_v53, %v157_v55 }
 0x306   :  { %v164_v58 = vsel %vm114_vm1, %v162_v56, 0.0  ;;  %v171_v59 = vsel %vm114_vm1, %v163_v57, 0.0 }
 0x307   :  { %v165_v60 = vrot.slane %v164_v58, 4  ;;  %v172_v61 = vrot.slane %v171_v59, 4 }
 0x309   :  { %v166_v62 = vadd.f32 %v165_v60, %v164_v58  ;;  %v173_v63 = vadd.f32 %v172_v61, %v171_v59 }
 0x30b   :  { %v167_v0 = vrot.slane %v166_v62, 2  ;;  %v174_v20 = vrot.slane %v173_v63, 2 }
 0x30d   :  { %v168_v1 = vadd.f32 %v167_v0, %v166_v62  ;;  %v175_v21 = vadd.f32 %v174_v20, %v173_v63 }
 0x30f   :  { %v176_v2 = vrot.slane %v175_v21, 1  ;;  %v169_v3 = vrot.slane %v168_v1, 1 }
 0x311   :  { %v177_v4 = vadd.f32 %v176_v2, %v175_v21  ;;  %v170_v5 = vadd.f32 %v169_v3, %v168_v1 }
 0x313   :  { %404 = vmatprep.mubr.f32.mxu1 %v177_v4 }
 0x314   :  { %405 = vmatmul.mubr.f32.vlgmr.msra.gmra.mxu1 %v170_v5 }
 0x3d4   :  { %v483_v6 = vpop.f32.mrf.mxu1 }
 0x3d6   :  { %v484_v7 = vpop.f32.mrf.mxu1 }
 0x3d7   :  { %v485_v8 = vadd.f32 %v484_v7, %v483_v6 }
 0x3d9   :  { %410 = vst [vmem:[%s778_s2] sm:$0x1] %v485_v8 }

</bundles_post_ra>
